<compile_context>
chip_gen: v7x
topology: tpu7x:2x2x1
jax: 0.10.0
libtpu: 0.0.40
codegen_flags: <defaults>
</compile_context>

<pallas_src>
import functools

import jax
import jax.numpy as jnp
from jax.experimental import pallas as pl
from jax.experimental.pallas import tpu as pltpu


def _normalized_lerp_kernel(alpha_ref, x_ref, res_ref, o_ref, *, chunk_rows, n_chunks):
    # alpha_ref: (1, D) f32; x_ref/res_ref/o_ref: (tile_rows, D) in I/O dtype.
    alpha = alpha_ref[...]                                      # (1, D) f32

    def lerp_norm(x, r):
        y = r + alpha * (x - r)                                 # (C, D) f32
        ss = jnp.sum(y * y, axis=-1, keepdims=True)             # (C, 1)
        # 1 / max(sqrt(ss), 1e-6) == rsqrt(max(ss, 1e-12))      (exact identity)
        inv = jax.lax.rsqrt(jnp.maximum(ss, 1e-12))
        return y * inv

    if n_chunks == 1:
        x = x_ref[...].astype(jnp.float32)
        r = res_ref[...].astype(jnp.float32)
        o_ref[...] = lerp_norm(x, r).astype(o_ref.dtype)
    else:
        def body(c, carry):
            r0 = pl.multiple_of(c * chunk_rows, chunk_rows)
            x = x_ref[pl.ds(r0, chunk_rows), :].astype(jnp.float32)
            r = res_ref[pl.ds(r0, chunk_rows), :].astype(jnp.float32)
            o_ref[pl.ds(r0, chunk_rows), :] = lerp_norm(x, r).astype(o_ref.dtype)
            return carry
        jax.lax.fori_loop(0, n_chunks, body, 0)


def _round_down(v, m):
    return (v // m) * m


def normalized_lerp(x, res, alpha, init, scale, *, tile_rows=None, chunk_rows=None):
    """x, res: (..., d_model); alpha: (d_model,). Returns same shape/dtype as x."""
    assert x.shape == res.shape
    d_model = x.shape[-1]
    assert alpha.shape == (d_model,)

    orig_shape = x.shape
    x2 = x.reshape(-1, d_model)
    r2 = res.reshape(-1, d_model)
    n_rows = x2.shape[0]
    itemsize = jnp.dtype(x.dtype).itemsize
    # Sublane packing alignment: 8 rows for f32, 16 for bf16, 32 for int8/fp8.
    align = max(8, 32 // itemsize)
    auto_tile = tile_rows is None

    # ---- generation-aware VMEM budget ---------------------------------------
    try:
        vmem_cap = int(pltpu.get_tpu_info().vmem_capacity_bytes)
    except Exception:
        vmem_cap = 64 << 20                  # conservative default (v7x-sized)
    if vmem_cap >= (100 << 20):              # v5e / v6e: 128 MiB physical VMEM
        limit_cap = 64 << 20
    else:                                    # v7x: 64 MiB physical VMEM
        limit_cap = 44 << 20
    headroom = 4 << 20

    # ---- f32 sub-chunk inside the kernel: bound temps to ~6 MiB --------------
    if chunk_rows is None:
        chunk_rows = _round_down((6 << 20) // (3 * d_model * 4), align)
        chunk_rows = max(align, min(256, chunk_rows))
    temp_bytes = 3 * chunk_rows * d_model * 4

    # ---- row-tile sizing: largest tile fitting the double-buffered budget ----
    if auto_tile:
        block_budget = max(limit_cap - headroom - temp_bytes, 2 << 20)
        tile_rows = block_budget // (6 * d_model * itemsize)
        tile_rows = max(align, _round_down(tile_rows, align))

    if n_rows >= align:
        # Don't exceed the data.
        tile_rows = max(align, min(tile_rows, _round_down(n_rows, align)))
        # Keep >= 4 grid steps when the input is large enough so the "parallel"
        # row axis is actually sharded across v7x's two TensorCores.
        if auto_tile:
            quarter = _round_down(n_rows // 4, align)
            if quarter >= align:
                tile_rows = min(tile_rows, quarter)
        # Make the in-kernel chunk loop exact.
        chunk_rows = min(chunk_rows, tile_rows)
        tile_rows = max(chunk_rows, _round_down(tile_rows, chunk_rows))
    else:
        # Tiny input: one block spanning the full (sub-aligned) row extent.
        tile_rows = n_rows
        chunk_rows = n_rows

    n_chunks = tile_rows // chunk_rows
    grid = (pl.cdiv(n_rows, tile_rows),)

    # Per-step footprint: double-buffered x/res/out blocks + chunked f32 temps
    # + resident alpha.  Raise scoped VMEM above v5e's 16 MiB default, stay
    # under the per-generation cap.
    working_set = (6 * tile_rows * d_model * itemsize
                   + temp_bytes
                   + 2 * d_model * 4)
    vmem_limit = int(min(limit_cap, max(working_set + headroom, 16 << 20)))

    # Effective alpha (ScalingLayer parameter treatment) — cheap wrapper glue.
    alpha_eff = (alpha.astype(jnp.float32) * (init / scale)).reshape(1, d_model)

    kernel = functools.partial(_normalized_lerp_kernel,
                               chunk_rows=chunk_rows, n_chunks=n_chunks)

    out = pl.pallas_call(
        kernel,
        out_shape=jax.ShapeDtypeStruct((n_rows, d_model), x.dtype),
        grid_spec=pltpu.PrefetchScalarGridSpec(
            num_scalar_prefetch=0,
            grid=grid,
            in_specs=[
                pl.BlockSpec((1, d_model), lambda i: (0, 0)),          # alpha (resident)
                pl.BlockSpec((tile_rows, d_model), lambda i: (i, 0)),  # x
                pl.BlockSpec((tile_rows, d_model), lambda i: (i, 0)),  # res
            ],
            out_specs=pl.BlockSpec((tile_rows, d_model), lambda i: (i, 0)),
        ),
        compiler_params=pltpu.CompilerParams(
            dimension_semantics=("parallel",),   # rows independent; megacore shards this
            vmem_limit_bytes=vmem_limit,
        ),
    )(alpha_eff, x2, r2)

    return out.reshape(orig_shape)


def _reference(x, res, alpha, init, scale, eps=1e-6):
    alpha_eff = alpha.astype(jnp.float32) * (init / scale)
    xf = x.astype(jnp.float32)
    rf = res.astype(jnp.float32)
    y = rf + alpha_eff * (xf - rf)
    nrm = jnp.sqrt(jnp.sum(y * y, axis=-1, keepdims=True))
    return (y / jnp.maximum(nrm, eps)).astype(x.dtype)


if __name__ == "__main__":
    key = jax.random.PRNGKey(0)

    # ---- test 1: small f32 case matching the module defaults ----------------
    batch, seq, d_model = 2, 8, 32
    init_val, scale_val = 0.05, 1.0 / (d_model ** 0.5)

    k1, k2, k3, k4 = jax.random.split(key, 4)
    x = jax.random.normal(k1, (batch, seq, d_model), dtype=jnp.float32)
    res = jax.random.normal(k2, (batch, seq, d_model), dtype=jnp.float32)
    # nn.Parameter(torch.full((d_model,), scale)) — deterministic init
    alpha = jnp.full((d_model,), scale_val, dtype=jnp.float32)

    out = normalized_lerp(x, res, alpha, init_val, scale_val)
    jax.block_until_ready(out)
    ref = _reference(x, res, alpha, init_val, scale_val)
    assert out.shape == ref.shape and out.dtype == x.dtype
    assert jnp.allclose(out, ref, atol=1e-5, rtol=1e-5), "f32 mismatch vs reference"

    # ---- test 2: bf16, multi grid step + in-kernel chunk loop path -----------
    xb = jax.random.normal(k3, (4, 64, d_model), dtype=jnp.bfloat16)
    rb = jax.random.normal(k4, (4, 64, d_model), dtype=jnp.bfloat16)
    outb = normalized_lerp(xb, rb, alpha, init_val, scale_val,
                           tile_rows=32, chunk_rows=16)
    jax.block_until_ready(outb)
    refb = _reference(xb, rb, alpha, init_val, scale_val)
    assert outb.shape == refb.shape and outb.dtype == xb.dtype
    assert jnp.allclose(outb.astype(jnp.float32), refb.astype(jnp.float32),
                        atol=2e-2, rtol=2e-2), "bf16 mismatch vs reference"

    print("KERNEL_OK")
</pallas_src>

<mosaic_0001>
module attributes {stable_mosaic.version = 11 : i64} {
  func.func @_normalized_lerp_kernel(%arg0: i32, %arg1: memref<1x32xf32, #tpu.memory_space<vmem>>, %arg2: memref<16x32xf32, #tpu.memory_space<vmem>>, %arg3: memref<16x32xf32, #tpu.memory_space<vmem>>, %arg4: memref<16x32xf32, #tpu.memory_space<vmem>>) attributes {dimension_semantics = [#tpu.dimension_semantics<parallel>], iteration_bounds = array<i64: 1>, scalar_prefetch = 0 : i64, scratch_operands = 0 : i64, tpu.core_type = #tpu.core_type<tc>, window_params = [{pipeline_mode = #tpu.pipeline_mode<synchronous>, transform_indices = @transform_0, window_bounds = array<i64: 1, 32>}, {transform_indices = @transform_1, window_bounds = array<i64: 16, 32>}, {transform_indices = @transform_2, window_bounds = array<i64: 16, 32>}, {transform_indices = @transform_3, window_bounds = array<i64: 16, 32>}]} {
    %c0 = arith.constant 0 : index
    %c0_0 = arith.constant 0 : index
    %0 = vector.load %arg1[%c0, %c0_0] : memref<1x32xf32, #tpu.memory_space<vmem>>, vector<1x32xf32>
    %c0_1 = arith.constant 0 : index
    %c0_2 = arith.constant 0 : index
    %1 = vector.load %arg2[%c0_1, %c0_2] : memref<16x32xf32, #tpu.memory_space<vmem>>, vector<16x32xf32>
    %c0_3 = arith.constant 0 : index
    %c0_4 = arith.constant 0 : index
    %2 = vector.load %arg3[%c0_3, %c0_4] : memref<16x32xf32, #tpu.memory_space<vmem>>, vector<16x32xf32>
    %3 = arith.subf %1, %2 : vector<16x32xf32>
    %4 = vector.broadcast %0 : vector<1x32xf32> to vector<16x32xf32>
    %5 = arith.mulf %4, %3 : vector<16x32xf32>
    %6 = arith.addf %2, %5 : vector<16x32xf32>
    %7 = arith.mulf %6, %6 : vector<16x32xf32>
    %cst = arith.constant dense<0.000000e+00> : vector<16xf32>
    %8 = vector.multi_reduction <add>, %7, %cst [1] : vector<16x32xf32> to vector<16xf32>
    %9 = vector.shape_cast %8 : vector<16xf32> to vector<16x1xf32>
    %cst_5 = arith.constant 9.99999996E-13 : f32
    %10 = vector.broadcast %cst_5 : f32 to vector<16x1xf32>
    %11 = arith.maximumf %9, %10 : vector<16x1xf32>
    %12 = math.rsqrt %11 : vector<16x1xf32>
    %13 = vector.broadcast %12 : vector<16x1xf32> to vector<16x32xf32>
    %14 = arith.mulf %6, %13 : vector<16x32xf32>
    %c0_6 = arith.constant 0 : index
    %c0_7 = arith.constant 0 : index
    %15 = vector.load %arg4[%c0_6, %c0_7] : memref<16x32xf32, #tpu.memory_space<vmem>>, vector<16x32xf32>
    tpu.vector_store %arg4[%c0_6, %c0_7], %14 {strides = array<i32>} : memref<16x32xf32, #tpu.memory_space<vmem>>, vector<16x32xf32>,
    return
  }
  func.func @transform_0(%arg0: i32) -> (i32, i32) {
    %c0_i32 = arith.constant 0 : i32
    %c0_i32_0 = arith.constant 0 : i32
    %c0_i32_1 = arith.constant 0 : i32
    return %c0_i32, %c0_i32_0 : i32, i32
  }
  func.func @transform_1(%arg0: i32) -> (i32, i32) {
    %c0_i32 = arith.constant 0 : i32
    %c0_i32_0 = arith.constant 0 : i32
    return %arg0, %c0_i32 : i32, i32
  }
  func.func @transform_2(%arg0: i32) -> (i32, i32) {
    %c0_i32 = arith.constant 0 : i32
    %c0_i32_0 = arith.constant 0 : i32
    return %arg0, %c0_i32 : i32, i32
  }
  func.func @transform_3(%arg0: i32) -> (i32, i32) {
    %c0_i32 = arith.constant 0 : i32
    %c0_i32_0 = arith.constant 0 : i32
    return %arg0, %c0_i32 : i32, i32
  }
}

</mosaic_0001>

<bundles_post_ra>
// kernel: tpu_custom_call.1
= control target key start
LH: loop header
LB: loop body
LE: loop exit
PB: predicated region body
PF: predicated region fallthrough
CT: control target
= control target key end

     0   :  { %8 = vsyncpa [#allocation3], 0  ;;  %s298_s0 = inlined_call_operand.hbm [shape: f32[1,32], index: 0, kind: input, shape index: {}]   ;;  %s299_s1 = inlined_call_operand.hbm [shape: f32[16,32], index: 1, kind: input, shape index: {}]   ;;  %s300_s2 = inlined_call_operand.hbm [shape: f32[16,32], index: 2, kind: input, shape index: {}]   ;;  %s301_s3 = inlined_call_operand.hbm [shape: f32[16,32], index: 3, kind: output, shape index: {}]  }
   0x1   :  { %9 = vsyncpa [#allocation6], 0 }
   0x2   :  { %10 = vsyncpa [#allocation4], 0  ;;  %s211_s12 = smov [#allocation5]   ;;  %s117_s16 = scalar_lea.hbm %s299_s1, 256 }
   0x3   :  { %s26_s13 = sshll.u32 %s211_s12, 4  ;;  %p118_p0 = scmp.ne.s32.totalorder %s299_s1, %s117_s16  ;;  %s27_s13 = int_to_ptr.vmem [resolvable:$true] %s26_s13 }
   0x4   :  { %p121_p1 = scmp.lt.u32.totalorder %s117_s16, %s299_s1 }
   0x6   :  { %p123_p2 = pnand %p121_p1, %p118_p0 }
   0x8   :  { %126 = shalt.err (!%p123_p2)
}
   0x9   :  { %s127_s21 = scalar_lea.vmem %s27_s13, 256  ;;  %p132_p4 = scmp.lt.s32.totalorder %s27_s13, %s27_s13 }
   0xa   :  { %p128_p3 = scmp.ne.s32.totalorder %s27_s13, %s127_s21  ;;  %p133_p5 = scmp.lt.s32.totalorder %s127_s21, %s127_s21 }
   0xc   :  { %p134_p6 = por %p133_p5, %p132_p4 }
   0xe   :  { %p135_p7 = pnand %p134_p6, %p128_p3 }
  0x10   :  { %138 = shalt.err (!%p135_p7)
}
  0x11   :  { %s212_s22 = smov 128   ;;  %s213_s23 = smov 8  }
  0x12   :  { %32 = dma.hbm_to_vmem [thread:$0]  %s299_s1, 256, %s27_s13, [#allocation6], %s212_s22, %s212_s22, %s213_s23  }
  0x13   :  { %s214_s26 = smov [#allocation2]   ;;  %s215_s28 = smov [#allocation7]  }
  0x14   :  { %s17_s27 = sshll.u32 %s214_s26, 4  ;;  %s38_s29 = sshll.u32 %s215_s28, 4  ;;  %s18_s27 = int_to_ptr.vmem [resolvable:$true] %s17_s27  ;;  %s39_s29 = int_to_ptr.vmem [resolvable:$true] %s38_s29 }
  0x15   :  { %s139_s5 = scalar_lea.hbm %s298_s0, 16 }
  0x16   :  { %p140_p8 = scmp.ne.s32.totalorder %s298_s0, %s139_s5  ;;  %p143_p9 = scmp.lt.u32.totalorder %s139_s5, %s298_s0 }
  0x18   :  { %p145_p10 = pnand %p143_p9, %p140_p8 }
  0x1a   :  { %148 = shalt.err (!%p145_p10)
}
  0x1b   :  { %s149_s1 = scalar_lea.vmem %s18_s27, 16  ;;  %s153_s10 = scalar_lea.vmem %s18_s27, 32 }
  0x1c   :  { %p150_p11 = scmp.ne.s32.totalorder %s18_s27, %s149_s1  ;;  %p154_p12 = scmp.lt.s32.totalorder %s18_s27, %s18_s27 }
  0x1d   :  { %p155_p13 = scmp.lt.s32.totalorder %s153_s10, %s149_s1 }
  0x1f   :  { %p156_p0 = por %p155_p13, %p154_p12 }
  0x21   :  { %p157_p1 = pnand %p156_p0, %p150_p11 }
  0x23   :  { %160 = shalt.err (!%p157_p1)
}
  0x24   :  { %20 = dma.hbm_to_vmem [thread:$0]  %s298_s0, 16, %s18_s27, [#allocation3]  }
  0x25   :  { %s161_s15 = scalar_lea.hbm %s300_s2, 256 }
  0x26   :  { %p162_p2 = scmp.ne.s32.totalorder %s300_s2, %s161_s15  ;;  %p165_p3 = scmp.lt.u32.totalorder %s161_s15, %s300_s2 }
  0x28   :  { %p167_p4 = pnand %p165_p3, %p162_p2 }
  0x2a   :  { %170 = shalt.err (!%p167_p4)
}
  0x2b   :  { %s171_s20 = scalar_lea.vmem %s39_s29, 256  ;;  %p176_p6 = scmp.lt.s32.totalorder %s39_s29, %s39_s29 }
  0x2c   :  { %p172_p5 = scmp.ne.s32.totalorder %s39_s29, %s171_s20  ;;  %p177_p7 = scmp.lt.s32.totalorder %s171_s20, %s171_s20 }
  0x2e   :  { %p178_p8 = por %p177_p7, %p176_p6 }
  0x30   :  { %p179_p9 = pnand %p178_p8, %p172_p5 }
  0x32   :  { %182 = shalt.err (!%p179_p9)
}
  0x33   :  { %44 = dma.hbm_to_vmem [thread:$0]  %s300_s2, 256, %s39_s29, [#allocation6], %s212_s22, %s212_s22, %s213_s23  }
  0x34   :  { %205 = dma.done.wait [#allocation3], 16  }
  0x35   :  { %206 = vsyncadd [#allocation3], 4294967280 }
  0x36   :  { %207 = dma.done.wait [#allocation6], 512  }
  0x37   :  { %208 = vsyncadd [#allocation6], 4294966784  ;;  %v106_v0 = vld [vmem:[#allocation2] ss:$0 sm:$0xff]  ;;  %v55_v1 = vld [vmem:[#allocation5] sm:$0xff]  ;;  %vm73_vm0 = vcmask 261120  }
  0x38   :  { %v57_v2 = vld [vmem:[#allocation7] sm:$0xff]  ;;  %v56_v4 = vld [vmem:[#allocation5 + $0x8] sm:$0xff]  ;;  %v58_v5 = vld [vmem:[#allocation7 + $0x8] sm:$0xff]  ;;  %s216_s2 = smov [#allocation8]  }
  0x39   :  { %v59_v3 = vsub.f32 %v55_v1, %v57_v2  ;;  %v60_v6 = vsub.f32 %v56_v4, %v58_v5  ;;  %s93_s24 = sshll.u32 %s216_s2, 4  ;;  %s94_s24 = int_to_ptr.vmem [resolvable:$true] %s93_s24 }
  0x3a   :  { %s183_s25 = scalar_lea.vmem %s94_s24, 256  ;;  %p188_p11 = scmp.lt.s32.totalorder %s94_s24, %s94_s24 }
  0x3b   :  { %v67_v7 = vmul.f32 %v106_v0, %v59_v3  ;;  %v68_v8 = vmul.f32 %v106_v0, %v60_v6  ;;  %p184_p10 = scmp.ne.s32.totalorder %s94_s24, %s183_s25  ;;  %p189_p12 = scmp.lt.s32.totalorder %s183_s25, %s183_s25 }
  0x3d   :  { %v69_v9 = vadd.f32 %v67_v7, %v57_v2  ;;  %v70_v10 = vadd.f32 %v68_v8, %v58_v5  ;;  %p190_p13 = por %p189_p12, %p188_p11 }
  0x3f   :  { %v71_v11 = vmul.f32 %v69_v9, %v69_v9  ;;  %v72_v12 = vmul.f32 %v70_v10, %v70_v10  ;;  %p191_p0 = pnand %p190_p13, %p184_p10 }
  0x41   :  { %v74_v13 = vsel %vm73_vm0, %v71_v11, 0.0  ;;  %v77_v14 = vsel %vm73_vm0, %v72_v12, 0.0 }
  0x42   :  { %75 = vadd.xlane.f32.xlu0 %v74_v13 }
  0x46   :  { %78 = vadd.xlane.f32.xlu0 %v77_v14 }
  0xcf   :  { %v76_v15 = vpop.xlane.xlu0 %75 }
  0xd0   :  { %v80_v16 = vmax.f32 %v76_v15, 1e-12 }
  0xd2   :  { %113 = vrsqrt.f32 %v80_v16 }
  0xd3   :  { %v79_v17 = vpop.xlane.xlu0 %78 }
  0xd4   :  { %v81_v18 = vmax.f32 %v79_v17, 1e-12 }
  0xd6   :  { %115 = vrsqrt.f32 %v81_v18 }
  0xdc   :  { %v114_v19 = vpop.eup %113 }
  0xdd   :  { %v84_v20 = vmul.f32 %v114_v19, %v69_v9 }
  0xdf   :  { %86 = vst.msk [vmem:[#allocation8] sm:$0xff] %vm73_vm0, %v84_v20 }
  0xe0   :  { %v116_v21 = vpop.eup %115 }
  0xe1   :  { %v85_v22 = vmul.f32 %v116_v21, %v70_v10 }
  0xe3   :  { %87 = vst.msk [vmem:[#allocation8 + $0x8] sm:$0xff] %vm73_vm0, %v85_v22 }
  0xe4   :  { %194 = shalt.err (!%p191_p0)
}
  0xe5   :  { %s195_s28 = scalar_lea.hbm %s301_s3, 256 }
  0xe6   :  { %p196_p1 = scmp.ne.s32.totalorder %s301_s3, %s195_s28  ;;  %p199_p2 = scmp.lt.u32.totalorder %s195_s28, %s301_s3 }
  0xe8   :  { %p201_p3 = pnand %p199_p2, %p196_p1 }
  0xea   :  { %204 = shalt.err (!%p201_p3)
}
  0xeb   :  { %99 = dma.vmem_to_hbm [thread:$0]  %s94_s24, 256, %s301_s3, [#allocation4], %s212_s22, %s212_s22, %s213_s23  }
  0xec   :  { %209 = dma.done.wait [#allocation4], 256  }
  0xed   :  { %210 = vsyncadd [#allocation4], 4294967040 }
  0xee   :  { %103 = vsyncpa [#allocation3], 1 }
  0xef   :  { %104 = vsyncpa [#allocation6], 1 }
  0xf0   :  { %105 = vsyncpa [#allocation4], 1 }

</bundles_post_ra>
